<compile_context>
chip_gen: v7x
topology: tpu7x:2x2x1
jax: 0.10.0
libtpu: 0.0.40
codegen_flags: <defaults>
</compile_context>

<pallas_src>
import functools
import math

import jax
import jax.numpy as jnp
from jax.experimental import pallas as pl
from jax.experimental.pallas import tpu as pltpu

LANES = 128
SUB = 8  # f32 sublanes per vreg


def _round_up(x, m):
    return (x + m - 1) // m * m


def _cdiv(a, b):
    return -(-a // b)


def _min_sublanes(dtype):
    # minimum sublane tiling for the block of an array of this dtype
    return {4: 8, 2: 16, 1: 32}.get(jnp.dtype(dtype).itemsize, 8)


def _soft_dice_kernel(x_ref, t_ref, inter_ref, den_ref, *, bps, total, ragged):
    """One (tm, 128) tile: accumulate per-(sublane,lane) sums of p*t and p+t."""
    i = pl.program_id(1)

    @pl.when(i == 0)
    def _():
        inter_ref[...] = jnp.zeros_like(inter_ref)
        den_ref[...] = jnp.zeros_like(den_ref)

    tm = x_ref.shape[0]
    x = x_ref[...].astype(jnp.float32)
    t = t_ref[...].astype(jnp.float32)

    # sigmoid via tanh: one EUP push instead of a multi-op VALU divide sequence.
    p = 0.5 * jnp.tanh(0.5 * x) + 0.5

    if ragged:
        # Mask pad / out-of-bounds elements of the (possibly partial) block against
        # the static valid element count.
        blk = pl.program_id(0) * bps + i
        row = jax.lax.broadcasted_iota(jnp.int32, (tm, LANES), 0)
        col = jax.lax.broadcasted_iota(jnp.int32, (tm, LANES), 1)
        valid = (blk * tm + row) * LANES + col < total
        p = jnp.where(valid, p, 0.0)
        t = jnp.where(valid, t, 0.0)

    # Pure-VALU cross-vreg accumulation into resident (8,128) output blocks;
    # the final sublane + lane reduce happens once, in the wrapper.
    inter_ref[...] += jnp.sum((p * t).reshape(tm // SUB, SUB, LANES), axis=0)
    den_ref[...] += jnp.sum((p + t).reshape(tm // SUB, SUB, LANES), axis=0)


def soft_dice_loss(logits, targets, *, smooth=0.005, block_rows=4096,
                   num_shards=2, vmem_limit_bytes=None):
    """1 - dice_coef(sigmoid(logits), targets), matching the PyTorch SoftDiceLoss."""
    assert logits.shape == targets.shape
    total = math.prod(logits.shape)

    align = max(_min_sublanes(logits.dtype), _min_sublanes(targets.dtype))
    rows = _round_up(_cdiv(total, LANES), align)
    pad = rows * LANES - total

    xf = logits.reshape(-1)
    tf = targets.reshape(-1)
    if pad:
        # Small zero pad only when the element count is not lane/sublane aligned;
        # padded elements are masked in-kernel so the pad value is irrelevant.
        xf = jnp.pad(xf, (0, pad))
        tf = jnp.pad(tf, (0, pad))
    x2 = xf.reshape(rows, LANES)
    t2 = tf.reshape(rows, LANES)

    tm = min(_round_up(block_rows, align), rows)     # row-tile (multiple of align)
    nblocks = _cdiv(rows, tm)
    ns = max(1, min(num_shards, nblocks))            # leading "parallel" shards (v7x: 2 TCs)
    bps = _cdiv(nblocks, ns)                         # blocks per shard
    ragged = (ns * bps * tm * LANES != total)        # any pad / partial / virtual block?
    clamp = (ns * bps != nblocks)                    # virtual blocks past the array?

    if clamp:
        in_map = lambda s, i: (jnp.minimum(s * bps + i, nblocks - 1), 0)
    else:
        in_map = lambda s, i: (s * bps + i, 0)
    out_map = lambda s, i: (s, 0, 0)

    kernel = functools.partial(_soft_dice_kernel, bps=bps, total=total, ragged=ragged)

    inter, den = pl.pallas_call(
        kernel,
        out_shape=(jax.ShapeDtypeStruct((ns, SUB, LANES), jnp.float32),
                   jax.ShapeDtypeStruct((ns, SUB, LANES), jnp.float32)),
        grid=(ns, bps),
        in_specs=[pl.BlockSpec((tm, LANES), in_map),
                  pl.BlockSpec((tm, LANES), in_map)],
        out_specs=(pl.BlockSpec((None, SUB, LANES), out_map),
                   pl.BlockSpec((None, SUB, LANES), out_map)),
        compiler_params=pltpu.CompilerParams(
            dimension_semantics=("parallel", "arbitrary"),
            vmem_limit_bytes=vmem_limit_bytes),
    )(x2, t2)

    # Tiny epilogue on (ns, 8, 128) partials: combine shards, reduce, form the loss.
    inter_sum = jnp.sum(inter)
    den_sum = jnp.sum(den)
    return 1.0 - (2.0 * inter_sum + smooth) / (den_sum + smooth)


def _soft_dice_loss_ref(logits, targets, smooth=0.005):
    """Pure-JAX reference (mirrors the PyTorch module)."""
    p = jax.nn.sigmoid(logits.astype(jnp.float32)).reshape(-1)
    t = targets.astype(jnp.float32).reshape(-1)
    inter = jnp.sum(p * t)
    return 1.0 - (2.0 * inter + smooth) / (jnp.sum(p) + jnp.sum(t) + smooth)


if __name__ == "__main__":
    key = jax.random.PRNGKey(0)
    k1, k2, k3, k4 = jax.random.split(key, 4)

    # Test 1: typical aligned f32 case (no pad, no mask, single block).
    logits = jax.random.normal(k1, (2, 4, 16, 16), jnp.float32)
    targets = jax.random.bernoulli(k2, 0.5, (2, 4, 16, 16)).astype(jnp.float32)
    loss = jax.block_until_ready(jax.jit(soft_dice_loss)(logits, targets))
    ref = _soft_dice_loss_ref(logits, targets)
    assert loss.shape == (), loss.shape
    assert bool(jnp.isfinite(loss))
    assert bool(jnp.allclose(loss, ref, rtol=1e-5, atol=1e-5)), (loss, ref)

    # Test 2: exercise the 2-shard (v7x dual-TensorCore) path with small row tiles.
    loss2 = jax.block_until_ready(
        jax.jit(functools.partial(soft_dice_loss, block_rows=8, num_shards=2))(
            logits, targets))
    assert bool(jnp.allclose(loss2, ref, rtol=1e-5, atol=1e-5)), (loss2, ref)

    # Test 3: ragged element count + bf16 inputs (exercises the in-kernel mask path).
    lg3 = jax.random.normal(k3, (2, 3, 7, 11), jnp.bfloat16)
    tg3 = jax.random.bernoulli(k4, 0.5, (2, 3, 7, 11)).astype(jnp.bfloat16)
    loss3 = jax.block_until_ready(jax.jit(soft_dice_loss)(lg3, tg3))
    ref3 = _soft_dice_loss_ref(lg3, tg3)
    assert bool(jnp.allclose(loss3, ref3, rtol=1e-4, atol=1e-4)), (loss3, ref3)

    print("KERNEL_OK")
</pallas_src>

<mosaic_0001>
module attributes {stable_mosaic.version = 11 : i64} {
  func.func @_soft_dice_kernel(%arg0: i32, %arg1: i32, %arg2: memref<16x128xf32, #tpu.memory_space<vmem>>, %arg3: memref<16x128xf32, #tpu.memory_space<vmem>>, %arg4: memref<1x8x128xf32, #tpu.memory_space<vmem>>, %arg5: memref<1x8x128xf32, #tpu.memory_space<vmem>>) attributes {dimension_semantics = [#tpu.dimension_semantics<parallel>, #tpu.dimension_semantics<arbitrary>], iteration_bounds = array<i64: 1, 1>, scalar_prefetch = 0 : i64, scratch_operands = 0 : i64, tpu.core_type = #tpu.core_type<tc>, window_params = [{transform_indices = @transform_0, window_bounds = array<i64: 16, 128>}, {transform_indices = @transform_1, window_bounds = array<i64: 16, 128>}, {transform_indices = @transform_2, window_bounds = array<i64: 1, 8, 128>}, {transform_indices = @transform_3, window_bounds = array<i64: 1, 8, 128>}]} {
    %c0_i32 = arith.constant 0 : i32
    %0 = arith.cmpi eq, %arg1, %c0_i32 : i32
    %1 = arith.extui %0 : i1 to i32
    %c0_i32_0 = arith.constant 0 : i32
    %2 = arith.cmpi ne, %1, %c0_i32_0 : i32
    scf.if %2 {
      %cst_20 = arith.constant 0.000000e+00 : f32
      %30 = vector.broadcast %cst_20 : f32 to vector<8x128xf32>
      %c0_21 = arith.constant 0 : index
      %c0_22 = arith.constant 0 : index
      %c0_23 = arith.constant 0 : index
      %31 = vector.load %arg4[%c0_21, %c0_22, %c0_23] : memref<1x8x128xf32, #tpu.memory_space<vmem>>, vector<1x8x128xf32>
      %32 = vector.shape_cast %31 : vector<1x8x128xf32> to vector<8x128xf32>
      %33 = vector.shape_cast %30 : vector<8x128xf32> to vector<1x8x128xf32>
      tpu.vector_store %arg4[%c0_21, %c0_22, %c0_23], %33 {strides = array<i32>} : memref<1x8x128xf32, #tpu.memory_space<vmem>>, vector<1x8x128xf32>,
      %cst_24 = arith.constant 0.000000e+00 : f32
      %34 = vector.broadcast %cst_24 : f32 to vector<8x128xf32>
      %c0_25 = arith.constant 0 : index
      %c0_26 = arith.constant 0 : index
      %c0_27 = arith.constant 0 : index
      %35 = vector.load %arg5[%c0_25, %c0_26, %c0_27] : memref<1x8x128xf32, #tpu.memory_space<vmem>>, vector<1x8x128xf32>
      %36 = vector.shape_cast %35 : vector<1x8x128xf32> to vector<8x128xf32>
      %37 = vector.shape_cast %34 : vector<8x128xf32> to vector<1x8x128xf32>
      tpu.vector_store %arg5[%c0_25, %c0_26, %c0_27], %37 {strides = array<i32>} : memref<1x8x128xf32, #tpu.memory_space<vmem>>, vector<1x8x128xf32>,
    } else {
    }
    %c0 = arith.constant 0 : index
    %c0_1 = arith.constant 0 : index
    %3 = vector.load %arg2[%c0, %c0_1] : memref<16x128xf32, #tpu.memory_space<vmem>>, vector<16x128xf32>
    %c0_2 = arith.constant 0 : index
    %c0_3 = arith.constant 0 : index
    %4 = vector.load %arg3[%c0_2, %c0_3] : memref<16x128xf32, #tpu.memory_space<vmem>>, vector<16x128xf32>
    %cst = arith.constant 5.000000e-01 : f32
    %5 = vector.broadcast %cst : f32 to vector<16x128xf32>
    %6 = arith.mulf %5, %3 : vector<16x128xf32>
    %7 = math.tanh %6 : vector<16x128xf32>
    %cst_4 = arith.constant 5.000000e-01 : f32
    %8 = vector.broadcast %cst_4 : f32 to vector<16x128xf32>
    %9 = arith.mulf %8, %7 : vector<16x128xf32>
    %cst_5 = arith.constant 5.000000e-01 : f32
    %10 = vector.broadcast %cst_5 : f32 to vector<16x128xf32>
    %11 = arith.addf %9, %10 : vector<16x128xf32>
    %c0_6 = arith.constant 0 : index
    %c0_7 = arith.constant 0 : index
    %c0_8 = arith.constant 0 : index
    %12 = vector.load %arg4[%c0_6, %c0_7, %c0_8] : memref<1x8x128xf32, #tpu.memory_space<vmem>>, vector<1x8x128xf32>
    %13 = vector.shape_cast %12 : vector<1x8x128xf32> to vector<8x128xf32>
    %14 = arith.mulf %11, %4 : vector<16x128xf32>
    %15 = vector.shape_cast %14 : vector<16x128xf32> to vector<2x8x128xf32>
    %cst_9 = arith.constant dense<0.000000e+00> : vector<8x128xf32>
    %16 = vector.multi_reduction <add>, %15, %cst_9 [0] : vector<2x8x128xf32> to vector<8x128xf32>
    %17 = arith.addf %13, %16 : vector<8x128xf32>
    %c0_10 = arith.constant 0 : index
    %c0_11 = arith.constant 0 : index
    %c0_12 = arith.constant 0 : index
    %18 = vector.load %arg4[%c0_10, %c0_11, %c0_12] : memref<1x8x128xf32, #tpu.memory_space<vmem>>, vector<1x8x128xf32>
    %19 = vector.shape_cast %18 : vector<1x8x128xf32> to vector<8x128xf32>
    %20 = vector.shape_cast %17 : vector<8x128xf32> to vector<1x8x128xf32>
    tpu.vector_store %arg4[%c0_10, %c0_11, %c0_12], %20 {strides = array<i32>} : memref<1x8x128xf32, #tpu.memory_space<vmem>>, vector<1x8x128xf32>,
    %c0_13 = arith.constant 0 : index
    %c0_14 = arith.constant 0 : index
    %c0_15 = arith.constant 0 : index
    %21 = vector.load %arg5[%c0_13, %c0_14, %c0_15] : memref<1x8x128xf32, #tpu.memory_space<vmem>>, vector<1x8x128xf32>
    %22 = vector.shape_cast %21 : vector<1x8x128xf32> to vector<8x128xf32>
    %23 = arith.addf %11, %4 : vector<16x128xf32>
    %24 = vector.shape_cast %23 : vector<16x128xf32> to vector<2x8x128xf32>
    %cst_16 = arith.constant dense<0.000000e+00> : vector<8x128xf32>
    %25 = vector.multi_reduction <add>, %24, %cst_16 [0] : vector<2x8x128xf32> to vector<8x128xf32>
    %26 = arith.addf %22, %25 : vector<8x128xf32>
    %c0_17 = arith.constant 0 : index
    %c0_18 = arith.constant 0 : index
    %c0_19 = arith.constant 0 : index
    %27 = vector.load %arg5[%c0_17, %c0_18, %c0_19] : memref<1x8x128xf32, #tpu.memory_space<vmem>>, vector<1x8x128xf32>
    %28 = vector.shape_cast %27 : vector<1x8x128xf32> to vector<8x128xf32>
    %29 = vector.shape_cast %26 : vector<8x128xf32> to vector<1x8x128xf32>
    tpu.vector_store %arg5[%c0_17, %c0_18, %c0_19], %29 {strides = array<i32>} : memref<1x8x128xf32, #tpu.memory_space<vmem>>, vector<1x8x128xf32>,
    return
  }
  func.func @transform_0(%arg0: i32, %arg1: i32) -> (i32, i32) {
    %c1_i32 = arith.constant 1 : i32
    %0 = arith.muli %arg0, %c1_i32 : i32
    %1 = arith.addi %0, %arg1 : i32
    %c0_i32 = arith.constant 0 : i32
    %c0_i32_0 = arith.constant 0 : i32
    return %1, %c0_i32 : i32, i32
  }
  func.func @transform_1(%arg0: i32, %arg1: i32) -> (i32, i32) {
    %c1_i32 = arith.constant 1 : i32
    %0 = arith.muli %arg0, %c1_i32 : i32
    %1 = arith.addi %0, %arg1 : i32
    %c0_i32 = arith.constant 0 : i32
    %c0_i32_0 = arith.constant 0 : i32
    return %1, %c0_i32 : i32, i32
  }
  func.func @transform_2(%arg0: i32, %arg1: i32) -> (i32, i32, i32) {
    %c0_i32 = arith.constant 0 : i32
    %c0_i32_0 = arith.constant 0 : i32
    %c0_i32_1 = arith.constant 0 : i32
    return %arg0, %c0_i32, %c0_i32_0 : i32, i32, i32
  }
  func.func @transform_3(%arg0: i32, %arg1: i32) -> (i32, i32, i32) {
    %c0_i32 = arith.constant 0 : i32
    %c0_i32_0 = arith.constant 0 : i32
    %c0_i32_1 = arith.constant 0 : i32
    return %arg0, %c0_i32, %c0_i32_0 : i32, i32, i32
  }
}

</mosaic_0001>

<bundles_post_ra>
// kernel: soft_dice_loss.1
= control target key start
LH: loop header
LB: loop body
LE: loop exit
PB: predicated region body
PF: predicated region fallthrough
CT: control target
= control target key end

     0   :  { %s150_s0 = inlined_call_operand.vmem [shape: f32[16,128], index: 0, kind: input, shape index: {}]   ;;  %s151_s1 = inlined_call_operand.vmem [shape: f32[16,128], index: 1, kind: input, shape index: {}]   ;;  %s152_s2 = inlined_call_operand.vmem [shape: f32[1,8,128], index: 2, kind: output, shape index: {0}]   ;;  %s153_s3 = inlined_call_operand.vmem [shape: f32[1,8,128], index: 3, kind: output, shape index: {1}]  }
   0x1   :  { %v63_v0 = vld [vmem:[%s150_s0] sm:$0xff]  ;;  %v64_v1 = vld [vmem:[%s150_s0 + $0x8] sm:$0xff] }
   0x2   :  { %v67_v2 = vmul.f32 0.5, %v63_v0  ;;  %v68_v3 = vmul.f32 0.5, %v64_v1  ;;  %v65_v7 = vld [vmem:[%s151_s1] sm:$0xff]  ;;  %v66_v9 = vld [vmem:[%s151_s1 + $0x8] sm:$0xff] }
   0x4   :  { %108 = vtanh.f32 %v67_v2 }
   0x5   :  { %110 = vtanh.f32 %v68_v3 }
   0xe   :  { %v109_v4 = vpop.eup %108 }
   0xf   :  { %v111_v5 = vpop.eup %110  ;;  %v71_v6 = vmul.f32 0.5, %v109_v4 }
  0x10   :  { %v72_v8 = vmul.f32 0.5, %v111_v5 }
  0x11   :  { %v73_v10 = vadd.f32 0.5, %v71_v6 }
  0x12   :  { %v74_v11 = vadd.f32 0.5, %v72_v8 }
  0x13   :  { %v76_v12 = vmul.f32 %v73_v10, %v65_v7  ;;  %v82_v13 = vadd.f32 %v73_v10, %v65_v7 }
  0x14   :  { %v77_v14 = vmul.f32 %v74_v11, %v66_v9  ;;  %v83_v15 = vadd.f32 %v74_v11, %v66_v9 }
  0x16   :  { %v78_v16 = vadd.f32 %v77_v14, %v76_v12  ;;  %v84_v17 = vadd.f32 %v83_v15, %v82_v13 }
  0x18   :  { %80 = vst [vmem:[%s152_s2] sm:$0xff] %v78_v16  ;;  %86 = vst [vmem:[%s153_s3] sm:$0xff] %v84_v17 }

</bundles_post_ra>
